<compile_context>
chip_gen: v6e
topology: v6e:2x2x1
jax: 0.10.0
libtpu: 0.0.40
codegen_flags: <defaults>
</compile_context>

<pallas_src>
import functools

import jax
import jax.numpy as jnp
from jax import lax
from jax.experimental import pallas as pl
from jax.experimental.pallas import tpu as pltpu


LN_EPS = 1e-5
# tanh-GELU (EUP) vs nn.GELU's exact erf (long VPU polynomial). Max abs
# difference ~3e-3; acceptable for inference, set False for exact semantics.
_GELU_APPROXIMATE = True


def _layernorm_f32(x, w, b):
    # x: (N, C) f32; w, b: (1, C) f32
    mu = jnp.mean(x, axis=-1, keepdims=True)
    xc = x - mu
    var = jnp.mean(xc * xc, axis=-1, keepdims=True)
    inv = lax.rsqrt(var + LN_EPS)
    return xc * inv * w + b


def vit_block_kernel(
    x_ref,                     # (N, C)  input dtype
    ln1_w_ref, ln1_b_ref,      # (1, C)  f32
    wqkv_ref,                  # (C, 3C) bf16  (Q columns pre-scaled by head_dim**-0.5)
    wproj_ref,                 # (C, C)  bf16  (unsplit proj weight)
    bproj_ref,                 # (1, C)  f32
    ln2_w_ref, ln2_b_ref,      # (1, C)  f32
    wfc1_ref, bfc1_ref,        # (C, Hm) bf16, (1, Hm) f32
    wfc2_ref, bfc2_ref,        # (Hm, C) bf16, (1, C) f32
    o_ref,                     # (N, C)
    attn_out_ref,              # scratch: (N, C) bf16 VMEM — per-head outputs land here
    *, num_heads,
):
    f32 = jnp.float32
    bf16 = jnp.bfloat16

    x = x_ref[...].astype(f32)                               # (N, C)
    N, C = x.shape
    hd = C // num_heads

    # ---- attention branch --------------------------------------------------
    xn = _layernorm_f32(x, ln1_w_ref[...], ln1_b_ref[...])

    # One big MXU matmul for QKV (bf16 operands, f32 accumulation), then a
    # single full-width cast to bf16 — q/k/v are consumed in bf16 anyway.
    qkv = jnp.dot(xn.astype(bf16), wqkv_ref[...],
                  preferred_element_type=f32).astype(bf16)   # (N, 3C) bf16

    for h in range(num_heads):
        q = qkv[:, h * hd:(h + 1) * hd]                       # (N, hd) bf16 (scale folded in)
        k = qkv[:, C + h * hd:C + (h + 1) * hd]               # (N, hd) bf16
        v = qkv[:, 2 * C + h * hd:2 * C + (h + 1) * hd]       # (N, hd) bf16

        # contract last dims directly: no explicit k transpose, no * scale
        s = lax.dot_general(q, k, (((1,), (1,)), ((), ())),
                            preferred_element_type=f32)       # (N, N) f32
        s = s - jnp.max(s, axis=-1, keepdims=True)
        p = jnp.exp(s)
        p = p * pl.reciprocal(jnp.sum(p, axis=-1, keepdims=True), approx=True)

        out_h = jnp.dot(p.astype(bf16), v,
                        preferred_element_type=f32)            # (N, hd) f32

        # static-lane-offset store into the (N, C) scratch (replaces concat /
        # per-head 64-deep projection matmuls)
        attn_out_ref[:, h * hd:(h + 1) * hd] = out_h.astype(bf16)

    # one full-C-contraction projection matmul
    proj = jnp.dot(attn_out_ref[...], wproj_ref[...],
                   preferred_element_type=f32)                 # (N, C) f32

    x1 = x + proj + bproj_ref[...]                             # (N, C) f32

    # ---- MLP branch ----------------------------------------------------------
    xn2 = _layernorm_f32(x1, ln2_w_ref[...], ln2_b_ref[...])

    h1 = jnp.dot(xn2.astype(bf16), wfc1_ref[...],
                 preferred_element_type=f32) + bfc1_ref[...]   # (N, Hm) f32
    h1 = jax.nn.gelu(h1, approximate=_GELU_APPROXIMATE)

    h2 = jnp.dot(h1.astype(bf16), wfc2_ref[...],
                 preferred_element_type=f32) + bfc2_ref[...]   # (N, C) f32

    o_ref[...] = (x1 + h2).astype(o_ref.dtype)


def vit_block(x, params, *, num_heads):
    """x: (B, N, C) -> (B, N, C). Dropout / DropPath are identity (p=0)."""
    B, N, C = x.shape
    hd = C // num_heads
    scale = hd ** (-0.5)
    Hm = params["wfc1"].shape[1]

    bf16 = jnp.bfloat16
    f32 = jnp.float32

    # Weight prep (outside the kernel, hoistable by the caller):
    #  * fold the attention scale into the Q columns of the QKV weight (f32,
    #    before the bf16 cast),
    #  * cast matmul weights to bf16,
    #  * give every 1-D parameter a lane-friendly (1, K) layout.
    wqkv = params["wqkv"].astype(f32).at[:, :C].multiply(scale).astype(bf16)  # (C, 3C)
    wproj = params["wproj"].astype(bf16)                                      # (C, C)
    wfc1 = params["wfc1"].astype(bf16)                                        # (C, Hm)
    wfc2 = params["wfc2"].astype(bf16)                                        # (Hm, C)

    ln1_w = params["ln1_w"].reshape(1, C).astype(f32)
    ln1_b = params["ln1_b"].reshape(1, C).astype(f32)
    ln2_w = params["ln2_w"].reshape(1, C).astype(f32)
    ln2_b = params["ln2_b"].reshape(1, C).astype(f32)
    bproj = params["bproj"].reshape(1, C).astype(f32)
    bfc1 = params["bfc1"].reshape(1, Hm).astype(f32)
    bfc2 = params["bfc2"].reshape(1, C).astype(f32)

    def const(shape):
        # Full-array block, same tile every grid step. Single-buffered: the
        # block is never re-fetched, double buffering would just waste VMEM.
        return pl.BlockSpec(shape, lambda b: tuple(0 for _ in shape),
                            pipeline_mode=pl.Buffered(1))

    kernel = functools.partial(vit_block_kernel, num_heads=num_heads)

    return pl.pallas_call(
        kernel,
        out_shape=jax.ShapeDtypeStruct((B, N, C), x.dtype),
        grid_spec=pltpu.PrefetchScalarGridSpec(
            num_scalar_prefetch=0,
            grid=(B,),
            in_specs=[
                # batch dim squeezed -> kernel sees (N, C) directly
                pl.BlockSpec((None, N, C), lambda b: (b, 0, 0)),     # x
                const((1, C)), const((1, C)),                        # ln1 w, b
                const((C, 3 * C)),                                   # qkv weight (bf16, Q pre-scaled)
                const((C, C)),                                       # proj weight (bf16, unsplit)
                const((1, C)),                                       # proj bias
                const((1, C)), const((1, C)),                        # ln2 w, b
                const((C, Hm)), const((1, Hm)),                      # fc1 w (bf16), b
                const((Hm, C)), const((1, C)),                       # fc2 w (bf16), b
            ],
            out_specs=pl.BlockSpec((None, N, C), lambda b: (b, 0, 0)),
            scratch_shapes=[pltpu.VMEM((N, C), bf16)],               # per-head attn output slab
        ),
        compiler_params=pltpu.CompilerParams(
            # batch axis shards across TensorCores on megacore parts (needs B >= 2)
            dimension_semantics=("parallel",),
            # single-buffered bf16 weights + activations fit comfortably here,
            # including on v7x's 64 MiB VMEM
            vmem_limit_bytes=40 * 1024 * 1024,
        ),
    )(
        x,
        ln1_w, ln1_b,
        wqkv,
        wproj, bproj,
        ln2_w, ln2_b,
        wfc1, bfc1,
        wfc2, bfc2,
    )


def _reference(x, params, *, num_heads):
    # Pure-JAX f32 reference of the same forward pass (exact-erf GELU,
    # unfolded scale), for correctness.
    B, N, C = x.shape
    hd = C // num_heads
    scale = hd ** (-0.5)

    def ln(v, w, b):
        mu = jnp.mean(v, axis=-1, keepdims=True)
        var = jnp.mean((v - mu) ** 2, axis=-1, keepdims=True)
        return (v - mu) / jnp.sqrt(var + LN_EPS) * w + b

    xn = ln(x, params["ln1_w"], params["ln1_b"])
    qkv = xn @ params["wqkv"]                                   # (B, N, 3C)
    qkv = qkv.reshape(B, N, 3, num_heads, hd).transpose(2, 0, 3, 1, 4)
    q, k, v = qkv[0], qkv[1], qkv[2]                            # (B, H, N, hd)
    attn = jnp.einsum("bhnd,bhmd->bhnm", q, k) * scale
    attn = jax.nn.softmax(attn, axis=-1)
    out = jnp.einsum("bhnm,bhmd->bhnd", attn, v)
    out = out.transpose(0, 2, 1, 3).reshape(B, N, C)
    out = out @ params["wproj"] + params["bproj"]
    x1 = x + out

    xn2 = ln(x1, params["ln2_w"], params["ln2_b"])
    h = jax.nn.gelu(xn2 @ params["wfc1"] + params["bfc1"], approximate=False)
    return x1 + (h @ params["wfc2"] + params["bfc2"])


if __name__ == "__main__":
    # Small test shapes.  NOTE: real ViT shapes (e.g. N=197, C=768, Hm=3072)
    # fill the 128-lane vregs / MXU properly; tune there, not at C=32.
    B, N, C = 2, 8, 32
    num_heads = 4
    mlp_ratio = 4.0
    Hm = int(C * mlp_ratio)

    key = jax.random.PRNGKey(0)
    ks = jax.random.split(key, 8)

    params = {
        "ln1_w": jnp.ones((C,), jnp.float32),
        "ln1_b": jnp.zeros((C,), jnp.float32),
        "wqkv": 0.02 * jax.random.normal(ks[0], (C, 3 * C), jnp.float32),
        "wproj": 0.02 * jax.random.normal(ks[1], (C, C), jnp.float32),
        "bproj": 0.02 * jax.random.normal(ks[2], (C,), jnp.float32),
        "ln2_w": jnp.ones((C,), jnp.float32),
        "ln2_b": jnp.zeros((C,), jnp.float32),
        "wfc1": 0.02 * jax.random.normal(ks[3], (C, Hm), jnp.float32),
        "bfc1": 0.02 * jax.random.normal(ks[4], (Hm,), jnp.float32),
        "wfc2": 0.02 * jax.random.normal(ks[5], (Hm, C), jnp.float32),
        "bfc2": 0.02 * jax.random.normal(ks[6], (C,), jnp.float32),
    }

    x = jax.random.normal(ks[7], (B, N, C), jnp.float32)

    out = vit_block(x, params, num_heads=num_heads)
    out = jax.block_until_ready(out)

    ref = _reference(x, params, num_heads=num_heads)
    assert out.shape == (B, N, C)
    # Tolerance reflects deliberate inference-precision trades: bf16 matmul
    # operands, EUP approx reciprocal in softmax, tanh-GELU.
    assert jnp.allclose(out, ref, atol=2e-2, rtol=2e-2), "mismatch vs JAX reference"

    print("KERNEL_OK")
</pallas_src>

<mosaic_0001>
module attributes {stable_mosaic.version = 11 : i64} {
  func.func @vit_block_kernel(%arg0: i32, %arg1: memref<1x8x32xf32, #tpu.memory_space<vmem>>, %arg2: memref<1x32xf32, #tpu.memory_space<vmem>>, %arg3: memref<1x32xf32, #tpu.memory_space<vmem>>, %arg4: memref<32x96xbf16, #tpu.memory_space<vmem>>, %arg5: memref<32x32xbf16, #tpu.memory_space<vmem>>, %arg6: memref<1x32xf32, #tpu.memory_space<vmem>>, %arg7: memref<1x32xf32, #tpu.memory_space<vmem>>, %arg8: memref<1x32xf32, #tpu.memory_space<vmem>>, %arg9: memref<32x128xbf16, #tpu.memory_space<vmem>>, %arg10: memref<1x128xf32, #tpu.memory_space<vmem>>, %arg11: memref<128x32xbf16, #tpu.memory_space<vmem>>, %arg12: memref<1x32xf32, #tpu.memory_space<vmem>>, %arg13: memref<1x8x32xf32, #tpu.memory_space<vmem>>, %arg14: memref<8x32xbf16, #tpu.memory_space<vmem>>) attributes {dimension_semantics = [#tpu.dimension_semantics<parallel>], iteration_bounds = array<i64: 2>, scalar_prefetch = 0 : i64, scratch_operands = 1 : i64, tpu.core_type = #tpu.core_type<tc>, window_params = [{transform_indices = @transform_0, window_bounds = array<i64: 1, 8, 32>}, {pipeline_mode = #tpu.pipeline_mode<synchronous>, transform_indices = @transform_1, window_bounds = array<i64: 1, 32>}, {pipeline_mode = #tpu.pipeline_mode<synchronous>, transform_indices = @transform_2, window_bounds = array<i64: 1, 32>}, {pipeline_mode = #tpu.pipeline_mode<synchronous>, transform_indices = @transform_3, window_bounds = array<i64: 32, 96>}, {pipeline_mode = #tpu.pipeline_mode<synchronous>, transform_indices = @transform_4, window_bounds = array<i64: 32, 32>}, {pipeline_mode = #tpu.pipeline_mode<synchronous>, transform_indices = @transform_5, window_bounds = array<i64: 1, 32>}, {pipeline_mode = #tpu.pipeline_mode<synchronous>, transform_indices = @transform_6, window_bounds = array<i64: 1, 32>}, {pipeline_mode = #tpu.pipeline_mode<synchronous>, transform_indices = @transform_7, window_bounds = array<i64: 1, 32>}, {pipeline_mode = #tpu.pipeline_mode<synchronous>, transform_indices = @transform_8, window_bounds = array<i64: 32, 128>}, {pipeline_mode = #tpu.pipeline_mode<synchronous>, transform_indices = @transform_9, window_bounds = array<i64: 1, 128>}, {pipeline_mode = #tpu.pipeline_mode<synchronous>, transform_indices = @transform_10, window_bounds = array<i64: 128, 32>}, {pipeline_mode = #tpu.pipeline_mode<synchronous>, transform_indices = @transform_11, window_bounds = array<i64: 1, 32>}, {transform_indices = @transform_12, window_bounds = array<i64: 1, 8, 32>}]} {
    %c0 = arith.constant 0 : index
    %c0_0 = arith.constant 0 : index
    %c0_1 = arith.constant 0 : index
    %0 = vector.load %arg1[%c0, %c0_0, %c0_1] : memref<1x8x32xf32, #tpu.memory_space<vmem>>, vector<1x8x32xf32>
    %1 = vector.shape_cast %0 : vector<1x8x32xf32> to vector<8x32xf32>
    %c0_2 = arith.constant 0 : index
    %c0_3 = arith.constant 0 : index
    %2 = vector.load %arg2[%c0_2, %c0_3] : memref<1x32xf32, #tpu.memory_space<vmem>>, vector<1x32xf32>
    %c0_4 = arith.constant 0 : index
    %c0_5 = arith.constant 0 : index
    %3 = vector.load %arg3[%c0_4, %c0_5] : memref<1x32xf32, #tpu.memory_space<vmem>>, vector<1x32xf32>
    %cst = arith.constant dense<0.000000e+00> : vector<8xf32>
    %4 = vector.multi_reduction <add>, %1, %cst [1] : vector<8x32xf32> to vector<8xf32>
    %5 = vector.shape_cast %4 : vector<8xf32> to vector<8x1xf32>
    %cst_6 = arith.constant 3.200000e+01 : f32
    %6 = vector.broadcast %cst_6 : f32 to vector<8x1xf32>
    %7 = arith.divf %5, %6 : vector<8x1xf32>
    %8 = vector.broadcast %7 : vector<8x1xf32> to vector<8x32xf32>
    %9 = arith.subf %1, %8 : vector<8x32xf32>
    %10 = arith.mulf %9, %9 : vector<8x32xf32>
    %cst_7 = arith.constant dense<0.000000e+00> : vector<8xf32>
    %11 = vector.multi_reduction <add>, %10, %cst_7 [1] : vector<8x32xf32> to vector<8xf32>
    %12 = vector.shape_cast %11 : vector<8xf32> to vector<8x1xf32>
    %cst_8 = arith.constant 3.200000e+01 : f32
    %13 = vector.broadcast %cst_8 : f32 to vector<8x1xf32>
    %14 = arith.divf %12, %13 : vector<8x1xf32>
    %cst_9 = arith.constant 9.99999974E-6 : f32
    %15 = vector.broadcast %cst_9 : f32 to vector<8x1xf32>
    %16 = arith.addf %14, %15 : vector<8x1xf32>
    %17 = math.rsqrt %16 : vector<8x1xf32>
    %18 = vector.broadcast %17 : vector<8x1xf32> to vector<8x32xf32>
    %19 = arith.mulf %9, %18 : vector<8x32xf32>
    %20 = vector.broadcast %2 : vector<1x32xf32> to vector<8x32xf32>
    %21 = arith.mulf %19, %20 : vector<8x32xf32>
    %22 = vector.broadcast %3 : vector<1x32xf32> to vector<8x32xf32>
    %23 = arith.addf %21, %22 : vector<8x32xf32>
    %24 = arith.truncf %23 : vector<8x32xf32> to vector<8x32xbf16>
    %c0_10 = arith.constant 0 : index
    %c0_11 = arith.constant 0 : index
    %25 = vector.load %arg4[%c0_10, %c0_11] : memref<32x96xbf16, #tpu.memory_space<vmem>>, vector<32x96xbf16>
    %cst_12 = arith.constant dense<0.000000e+00> : vector<8x96xf32>
    %26 = tpu.matmul %24, %25, %cst_12 {dimension_numbers = #tpu.dot_dimension_numbers<[1], [0], [0], [1], [0, 0, 1, 1], [], []>} : vector<8x32xbf16>, vector<32x96xbf16>, vector<8x96xf32> -> vector<8x96xf32>
    %27 = arith.truncf %26 : vector<8x96xf32> to vector<8x96xbf16>
    %28 = vector.extract_strided_slice %27 {offsets = [0, 0], sizes = [8, 8], strides = [1, 1]} : vector<8x96xbf16> to vector<8x8xbf16>
    %29 = vector.extract_strided_slice %27 {offsets = [0, 32], sizes = [8, 8], strides = [1, 1]} : vector<8x96xbf16> to vector<8x8xbf16>
    %30 = vector.extract_strided_slice %27 {offsets = [0, 64], sizes = [8, 8], strides = [1, 1]} : vector<8x96xbf16> to vector<8x8xbf16>
    %cst_13 = arith.constant dense<0.000000e+00> : vector<8x8xf32>
    %31 = tpu.matmul %28, %29, %cst_13 {dimension_numbers = #tpu.dot_dimension_numbers<[1], [1], [0], [0], [0, 0, 1, 0], [], []>} : vector<8x8xbf16>, vector<8x8xbf16>, vector<8x8xf32> -> vector<8x8xf32>
    %cst_14 = arith.constant dense<0xFF800000> : vector<8xf32>
    %32 = vector.multi_reduction <maximumf>, %31, %cst_14 [1] : vector<8x8xf32> to vector<8xf32>
    %33 = vector.shape_cast %32 : vector<8xf32> to vector<8x1xf32>
    %34 = vector.broadcast %33 : vector<8x1xf32> to vector<8x8xf32>
    %35 = arith.subf %31, %34 : vector<8x8xf32>
    %36 = math.exp %35 : vector<8x8xf32>
    %cst_15 = arith.constant dense<0.000000e+00> : vector<8xf32>
    %37 = vector.multi_reduction <add>, %36, %cst_15 [1] : vector<8x8xf32> to vector<8xf32>
    %38 = vector.shape_cast %37 : vector<8xf32> to vector<8x1xf32>
    %39 = tpu.reciprocal %38 {approx = true} : vector<8x1xf32> -> vector<8x1xf32>
    %40 = vector.broadcast %39 : vector<8x1xf32> to vector<8x8xf32>
    %41 = arith.mulf %36, %40 : vector<8x8xf32>
    %42 = arith.truncf %41 : vector<8x8xf32> to vector<8x8xbf16>
    %cst_16 = arith.constant dense<0.000000e+00> : vector<8x8xf32>
    %43 = tpu.matmul %42, %30, %cst_16 {dimension_numbers = #tpu.dot_dimension_numbers<[1], [0], [0], [1], [0, 0, 1, 1], [], []>} : vector<8x8xbf16>, vector<8x8xbf16>, vector<8x8xf32> -> vector<8x8xf32>
    %44 = arith.truncf %43 : vector<8x8xf32> to vector<8x8xbf16>
    %c0_17 = arith.constant 0 : index
    %c0_18 = arith.constant 0 : index
    %45 = vector.load %arg14[%c0_17, %c0_18] : memref<8x32xbf16, #tpu.memory_space<vmem>>, vector<8x8xbf16>
    tpu.vector_store %arg14[%c0_17, %c0_18], %44 {strides = array<i32>} : memref<8x32xbf16, #tpu.memory_space<vmem>>, vector<8x8xbf16>,
    %46 = vector.extract_strided_slice %27 {offsets = [0, 8], sizes = [8, 8], strides = [1, 1]} : vector<8x96xbf16> to vector<8x8xbf16>
    %47 = vector.extract_strided_slice %27 {offsets = [0, 40], sizes = [8, 8], strides = [1, 1]} : vector<8x96xbf16> to vector<8x8xbf16>
    %48 = vector.extract_strided_slice %27 {offsets = [0, 72], sizes = [8, 8], strides = [1, 1]} : vector<8x96xbf16> to vector<8x8xbf16>
    %cst_19 = arith.constant dense<0.000000e+00> : vector<8x8xf32>
    %49 = tpu.matmul %46, %47, %cst_19 {dimension_numbers = #tpu.dot_dimension_numbers<[1], [1], [0], [0], [0, 0, 1, 0], [], []>} : vector<8x8xbf16>, vector<8x8xbf16>, vector<8x8xf32> -> vector<8x8xf32>
    %cst_20 = arith.constant dense<0xFF800000> : vector<8xf32>
    %50 = vector.multi_reduction <maximumf>, %49, %cst_20 [1] : vector<8x8xf32> to vector<8xf32>
    %51 = vector.shape_cast %50 : vector<8xf32> to vector<8x1xf32>
    %52 = vector.broadcast %51 : vector<8x1xf32> to vector<8x8xf32>
    %53 = arith.subf %49, %52 : vector<8x8xf32>
    %54 = math.exp %53 : vector<8x8xf32>
    %cst_21 = arith.constant dense<0.000000e+00> : vector<8xf32>
    %55 = vector.multi_reduction <add>, %54, %cst_21 [1] : vector<8x8xf32> to vector<8xf32>
    %56 = vector.shape_cast %55 : vector<8xf32> to vector<8x1xf32>
    %57 = tpu.reciprocal %56 {approx = true} : vector<8x1xf32> -> vector<8x1xf32>
    %58 = vector.broadcast %57 : vector<8x1xf32> to vector<8x8xf32>
    %59 = arith.mulf %54, %58 : vector<8x8xf32>
    %60 = arith.truncf %59 : vector<8x8xf32> to vector<8x8xbf16>
    %cst_22 = arith.constant dense<0.000000e+00> : vector<8x8xf32>
    %61 = tpu.matmul %60, %48, %cst_22 {dimension_numbers = #tpu.dot_dimension_numbers<[1], [0], [0], [1], [0, 0, 1, 1], [], []>} : vector<8x8xbf16>, vector<8x8xbf16>, vector<8x8xf32> -> vector<8x8xf32>
    %62 = arith.truncf %61 : vector<8x8xf32> to vector<8x8xbf16>
    %c0_23 = arith.constant 0 : index
    %c8 = arith.constant 8 : index
    %63 = vector.load %arg14[%c0_23, %c8] : memref<8x32xbf16, #tpu.memory_space<vmem>>, vector<8x8xbf16>
    tpu.vector_store %arg14[%c0_23, %c8], %62 {strides = array<i32>} : memref<8x32xbf16, #tpu.memory_space<vmem>>, vector<8x8xbf16>,
    %64 = vector.extract_strided_slice %27 {offsets = [0, 16], sizes = [8, 8], strides = [1, 1]} : vector<8x96xbf16> to vector<8x8xbf16>
    %65 = vector.extract_strided_slice %27 {offsets = [0, 48], sizes = [8, 8], strides = [1, 1]} : vector<8x96xbf16> to vector<8x8xbf16>
    %66 = vector.extract_strided_slice %27 {offsets = [0, 80], sizes = [8, 8], strides = [1, 1]} : vector<8x96xbf16> to vector<8x8xbf16>
    %cst_24 = arith.constant dense<0.000000e+00> : vector<8x8xf32>
    %67 = tpu.matmul %64, %65, %cst_24 {dimension_numbers = #tpu.dot_dimension_numbers<[1], [1], [0], [0], [0, 0, 1, 0], [], []>} : vector<8x8xbf16>, vector<8x8xbf16>, vector<8x8xf32> -> vector<8x8xf32>
    %cst_25 = arith.constant dense<0xFF800000> : vector<8xf32>
    %68 = vector.multi_reduction <maximumf>, %67, %cst_25 [1] : vector<8x8xf32> to vector<8xf32>
    %69 = vector.shape_cast %68 : vector<8xf32> to vector<8x1xf32>
    %70 = vector.broadcast %69 : vector<8x1xf32> to vector<8x8xf32>
    %71 = arith.subf %67, %70 : vector<8x8xf32>
    %72 = math.exp %71 : vector<8x8xf32>
    %cst_26 = arith.constant dense<0.000000e+00> : vector<8xf32>
    %73 = vector.multi_reduction <add>, %72, %cst_26 [1] : vector<8x8xf32> to vector<8xf32>
    %74 = vector.shape_cast %73 : vector<8xf32> to vector<8x1xf32>
    %75 = tpu.reciprocal %74 {approx = true} : vector<8x1xf32> -> vector<8x1xf32>
    %76 = vector.broadcast %75 : vector<8x1xf32> to vector<8x8xf32>
    %77 = arith.mulf %72, %76 : vector<8x8xf32>
    %78 = arith.truncf %77 : vector<8x8xf32> to vector<8x8xbf16>
    %cst_27 = arith.constant dense<0.000000e+00> : vector<8x8xf32>
    %79 = tpu.matmul %78, %66, %cst_27 {dimension_numbers = #tpu.dot_dimension_numbers<[1], [0], [0], [1], [0, 0, 1, 1], [], []>} : vector<8x8xbf16>, vector<8x8xbf16>, vector<8x8xf32> -> vector<8x8xf32>
    %80 = arith.truncf %79 : vector<8x8xf32> to vector<8x8xbf16>
    %c0_28 = arith.constant 0 : index
    %c16 = arith.constant 16 : index
    %81 = vector.load %arg14[%c0_28, %c16] : memref<8x32xbf16, #tpu.memory_space<vmem>>, vector<8x8xbf16>
    tpu.vector_store %arg14[%c0_28, %c16], %80 {strides = array<i32>} : memref<8x32xbf16, #tpu.memory_space<vmem>>, vector<8x8xbf16>,
    %82 = vector.extract_strided_slice %27 {offsets = [0, 24], sizes = [8, 8], strides = [1, 1]} : vector<8x96xbf16> to vector<8x8xbf16>
    %83 = vector.extract_strided_slice %27 {offsets = [0, 56], sizes = [8, 8], strides = [1, 1]} : vector<8x96xbf16> to vector<8x8xbf16>
    %84 = vector.extract_strided_slice %27 {offsets = [0, 88], sizes = [8, 8], strides = [1, 1]} : vector<8x96xbf16> to vector<8x8xbf16>
    %cst_29 = arith.constant dense<0.000000e+00> : vector<8x8xf32>
    %85 = tpu.matmul %82, %83, %cst_29 {dimension_numbers = #tpu.dot_dimension_numbers<[1], [1], [0], [0], [0, 0, 1, 0], [], []>} : vector<8x8xbf16>, vector<8x8xbf16>, vector<8x8xf32> -> vector<8x8xf32>
    %cst_30 = arith.constant dense<0xFF800000> : vector<8xf32>
    %86 = vector.multi_reduction <maximumf>, %85, %cst_30 [1] : vector<8x8xf32> to vector<8xf32>
    %87 = vector.shape_cast %86 : vector<8xf32> to vector<8x1xf32>
    %88 = vector.broadcast %87 : vector<8x1xf32> to vector<8x8xf32>
    %89 = arith.subf %85, %88 : vector<8x8xf32>
    %90 = math.exp %89 : vector<8x8xf32>
    %cst_31 = arith.constant dense<0.000000e+00> : vector<8xf32>
    %91 = vector.multi_reduction <add>, %90, %cst_31 [1] : vector<8x8xf32> to vector<8xf32>
    %92 = vector.shape_cast %91 : vector<8xf32> to vector<8x1xf32>
    %93 = tpu.reciprocal %92 {approx = true} : vector<8x1xf32> -> vector<8x1xf32>
    %94 = vector.broadcast %93 : vector<8x1xf32> to vector<8x8xf32>
    %95 = arith.mulf %90, %94 : vector<8x8xf32>
    %96 = arith.truncf %95 : vector<8x8xf32> to vector<8x8xbf16>
    %cst_32 = arith.constant dense<0.000000e+00> : vector<8x8xf32>
    %97 = tpu.matmul %96, %84, %cst_32 {dimension_numbers = #tpu.dot_dimension_numbers<[1], [0], [0], [1], [0, 0, 1, 1], [], []>} : vector<8x8xbf16>, vector<8x8xbf16>, vector<8x8xf32> -> vector<8x8xf32>
    %98 = arith.truncf %97 : vector<8x8xf32> to vector<8x8xbf16>
    %c0_33 = arith.constant 0 : index
    %c24 = arith.constant 24 : index
    %99 = vector.load %arg14[%c0_33, %c24] : memref<8x32xbf16, #tpu.memory_space<vmem>>, vector<8x8xbf16>
    tpu.vector_store %arg14[%c0_33, %c24], %98 {strides = array<i32>} : memref<8x32xbf16, #tpu.memory_space<vmem>>, vector<8x8xbf16>,
    %c0_34 = arith.constant 0 : index
    %c0_35 = arith.constant 0 : index
    %100 = vector.load %arg14[%c0_34, %c0_35] : memref<8x32xbf16, #tpu.memory_space<vmem>>, vector<8x32xbf16>
    %c0_36 = arith.constant 0 : index
    %c0_37 = arith.constant 0 : index
    %101 = vector.load %arg5[%c0_36, %c0_37] : memref<32x32xbf16, #tpu.memory_space<vmem>>, vector<32x32xbf16>
    %cst_38 = arith.constant dense<0.000000e+00> : vector<8x32xf32>
    %102 = tpu.matmul %100, %101, %cst_38 {dimension_numbers = #tpu.dot_dimension_numbers<[1], [0], [0], [1], [0, 0, 1, 1], [], []>} : vector<8x32xbf16>, vector<32x32xbf16>, vector<8x32xf32> -> vector<8x32xf32>
    %103 = arith.addf %1, %102 : vector<8x32xf32>
    %c0_39 = arith.constant 0 : index
    %c0_40 = arith.constant 0 : index
    %104 = vector.load %arg6[%c0_39, %c0_40] : memref<1x32xf32, #tpu.memory_space<vmem>>, vector<1x32xf32>
    %105 = vector.broadcast %104 : vector<1x32xf32> to vector<8x32xf32>
    %106 = arith.addf %103, %105 : vector<8x32xf32>
    %c0_41 = arith.constant 0 : index
    %c0_42 = arith.constant 0 : index
    %107 = vector.load %arg7[%c0_41, %c0_42] : memref<1x32xf32, #tpu.memory_space<vmem>>, vector<1x32xf32>
    %c0_43 = arith.constant 0 : index
    %c0_44 = arith.constant 0 : index
    %108 = vector.load %arg8[%c0_43, %c0_44] : memref<1x32xf32, #tpu.memory_space<vmem>>, vector<1x32xf32>
    %cst_45 = arith.constant dense<0.000000e+00> : vector<8xf32>
    %109 = vector.multi_reduction <add>, %106, %cst_45 [1] : vector<8x32xf32> to vector<8xf32>
    %110 = vector.shape_cast %109 : vector<8xf32> to vector<8x1xf32>
    %cst_46 = arith.constant 3.200000e+01 : f32
    %111 = vector.broadcast %cst_46 : f32 to vector<8x1xf32>
    %112 = arith.divf %110, %111 : vector<8x1xf32>
    %113 = vector.broadcast %112 : vector<8x1xf32> to vector<8x32xf32>
    %114 = arith.subf %106, %113 : vector<8x32xf32>
    %115 = arith.mulf %114, %114 : vector<8x32xf32>
    %cst_47 = arith.constant dense<0.000000e+00> : vector<8xf32>
    %116 = vector.multi_reduction <add>, %115, %cst_47 [1] : vector<8x32xf32> to vector<8xf32>
    %117 = vector.shape_cast %116 : vector<8xf32> to vector<8x1xf32>
    %cst_48 = arith.constant 3.200000e+01 : f32
    %118 = vector.broadcast %cst_48 : f32 to vector<8x1xf32>
    %119 = arith.divf %117, %118 : vector<8x1xf32>
    %cst_49 = arith.constant 9.99999974E-6 : f32
    %120 = vector.broadcast %cst_49 : f32 to vector<8x1xf32>
    %121 = arith.addf %119, %120 : vector<8x1xf32>
    %122 = math.rsqrt %121 : vector<8x1xf32>
    %123 = vector.broadcast %122 : vector<8x1xf32> to vector<8x32xf32>
    %124 = arith.mulf %114, %123 : vector<8x32xf32>
    %125 = vector.broadcast %107 : vector<1x32xf32> to vector<8x32xf32>
    %126 = arith.mulf %124, %125 : vector<8x32xf32>
    %127 = vector.broadcast %108 : vector<1x32xf32> to vector<8x32xf32>
    %128 = arith.addf %126, %127 : vector<8x32xf32>
    %129 = arith.truncf %128 : vector<8x32xf32> to vector<8x32xbf16>
    %c0_50 = arith.constant 0 : index
    %c0_51 = arith.constant 0 : index
    %130 = vector.load %arg9[%c0_50, %c0_51] : memref<32x128xbf16, #tpu.memory_space<vmem>>, vector<32x128xbf16>
    %cst_52 = arith.constant dense<0.000000e+00> : vector<8x128xf32>
    %131 = tpu.matmul %129, %130, %cst_52 {dimension_numbers = #tpu.dot_dimension_numbers<[1], [0], [0], [1], [0, 0, 1, 1], [], []>} : vector<8x32xbf16>, vector<32x128xbf16>, vector<8x128xf32> -> vector<8x128xf32>
    %c0_53 = arith.constant 0 : index
    %c0_54 = arith.constant 0 : index
    %132 = vector.load %arg10[%c0_53, %c0_54] : memref<1x128xf32, #tpu.memory_space<vmem>>, vector<1x128xf32>
    %133 = vector.broadcast %132 : vector<1x128xf32> to vector<8x128xf32>
    %134 = arith.addf %131, %133 : vector<8x128xf32>
    %135 = arith.mulf %134, %134 : vector<8x128xf32>
    %136 = arith.mulf %134, %135 : vector<8x128xf32>
    %cst_55 = arith.constant 4.471500e-02 : f32
    %137 = vector.broadcast %cst_55 : f32 to vector<8x128xf32>
    %138 = arith.mulf %137, %136 : vector<8x128xf32>
    %139 = arith.addf %134, %138 : vector<8x128xf32>
    %cst_56 = arith.constant 0.797884583 : f32
    %140 = vector.broadcast %cst_56 : f32 to vector<8x128xf32>
    %141 = arith.mulf %140, %139 : vector<8x128xf32>
    %142 = math.tanh %141 : vector<8x128xf32>
    %cst_57 = arith.constant 1.000000e+00 : f32
    %143 = vector.broadcast %cst_57 : f32 to vector<8x128xf32>
    %144 = arith.addf %143, %142 : vector<8x128xf32>
    %cst_58 = arith.constant 5.000000e-01 : f32
    %145 = vector.broadcast %cst_58 : f32 to vector<8x128xf32>
    %146 = arith.mulf %145, %144 : vector<8x128xf32>
    %147 = arith.mulf %134, %146 : vector<8x128xf32>
    %148 = arith.truncf %147 : vector<8x128xf32> to vector<8x128xbf16>
    %c0_59 = arith.constant 0 : index
    %c0_60 = arith.constant 0 : index
    %149 = vector.load %arg11[%c0_59, %c0_60] : memref<128x32xbf16, #tpu.memory_space<vmem>>, vector<128x32xbf16>
    %cst_61 = arith.constant dense<0.000000e+00> : vector<8x32xf32>
    %150 = tpu.matmul %148, %149, %cst_61 {dimension_numbers = #tpu.dot_dimension_numbers<[1], [0], [0], [1], [0, 0, 1, 1], [], []>} : vector<8x128xbf16>, vector<128x32xbf16>, vector<8x32xf32> -> vector<8x32xf32>
    %c0_62 = arith.constant 0 : index
    %c0_63 = arith.constant 0 : index
    %151 = vector.load %arg12[%c0_62, %c0_63] : memref<1x32xf32, #tpu.memory_space<vmem>>, vector<1x32xf32>
    %152 = vector.broadcast %151 : vector<1x32xf32> to vector<8x32xf32>
    %153 = arith.addf %150, %152 : vector<8x32xf32>
    %154 = arith.addf %106, %153 : vector<8x32xf32>
    %c0_64 = arith.constant 0 : index
    %c0_65 = arith.constant 0 : index
    %c0_66 = arith.constant 0 : index
    %155 = vector.load %arg13[%c0_64, %c0_65, %c0_66] : memref<1x8x32xf32, #tpu.memory_space<vmem>>, vector<1x8x32xf32>
    %156 = vector.shape_cast %155 : vector<1x8x32xf32> to vector<8x32xf32>
    %157 = vector.shape_cast %154 : vector<8x32xf32> to vector<1x8x32xf32>
    tpu.vector_store %arg13[%c0_64, %c0_65, %c0_66], %157 {strides = array<i32>} : memref<1x8x32xf32, #tpu.memory_space<vmem>>, vector<1x8x32xf32>,
    return
  }
  func.func @transform_0(%arg0: i32) -> (i32, i32, i32) {
    %c0_i32 = arith.constant 0 : i32
    %c0_i32_0 = arith.constant 0 : i32
    %c0_i32_1 = arith.constant 0 : i32
    return %arg0, %c0_i32, %c0_i32_0 : i32, i32, i32
  }
  func.func @transform_1(%arg0: i32) -> (i32, i32) {
    %c0_i32 = arith.constant 0 : i32
    %c0_i32_0 = arith.constant 0 : i32
    %c0_i32_1 = arith.constant 0 : i32
    return %c0_i32, %c0_i32_0 : i32, i32
  }
  func.func @transform_2(%arg0: i32) -> (i32, i32) {
    %c0_i32 = arith.constant 0 : i32
    %c0_i32_0 = arith.constant 0 : i32
    %c0_i32_1 = arith.constant 0 : i32
    return %c0_i32, %c0_i32_0 : i32, i32
  }
  func.func @transform_3(%arg0: i32) -> (i32, i32) {
    %c0_i32 = arith.constant 0 : i32
    %c0_i32_0 = arith.constant 0 : i32
    %c0_i32_1 = arith.constant 0 : i32
    return %c0_i32, %c0_i32_0 : i32, i32
  }
  func.func @transform_4(%arg0: i32) -> (i32, i32) {
    %c0_i32 = arith.constant 0 : i32
    %c0_i32_0 = arith.constant 0 : i32
    %c0_i32_1 = arith.constant 0 : i32
    return %c0_i32, %c0_i32_0 : i32, i32
  }
  func.func @transform_5(%arg0: i32) -> (i32, i32) {
    %c0_i32 = arith.constant 0 : i32
    %c0_i32_0 = arith.constant 0 : i32
    %c0_i32_1 = arith.constant 0 : i32
    return %c0_i32, %c0_i32_0 : i32, i32
  }
  func.func @transform_6(%arg0: i32) -> (i32, i32) {
    %c0_i32 = arith.constant 0 : i32
    %c0_i32_0 = arith.constant 0 : i32
    %c0_i32_1 = arith.constant 0 : i32
    return %c0_i32, %c0_i32_0 : i32, i32
  }
  func.func @transform_7(%arg0: i32) -> (i32, i32) {
    %c0_i32 = arith.constant 0 : i32
    %c0_i32_0 = arith.constant 0 : i32
    %c0_i32_1 = arith.constant 0 : i32
    return %c0_i32, %c0_i32_0 : i32, i32
  }
  func.func @transform_8(%arg0: i32) -> (i32, i32) {
    %c0_i32 = arith.constant 0 : i32
    %c0_i32_0 = arith.constant 0 : i32
    %c0_i32_1 = arith.constant 0 : i32
    return %c0_i32, %c0_i32_0 : i32, i32
  }
  func.func @transform_9(%arg0: i32) -> (i32, i32) {
    %c0_i32 = arith.constant 0 : i32
    %c0_i32_0 = arith.constant 0 : i32
    %c0_i32_1 = arith.constant 0 : i32
    return %c0_i32, %c0_i32_0 : i32, i32
  }
  func.func @transform_10(%arg0: i32) -> (i32, i32) {
    %c0_i32 = arith.constant 0 : i32
    %c0_i32_0 = arith.constant 0 : i32
    %c0_i32_1 = arith.constant 0 : i32
    return %c0_i32, %c0_i32_0 : i32, i32
  }
  func.func @transform_11(%arg0: i32) -> (i32, i32) {
    %c0_i32 = arith.constant 0 : i32
    %c0_i32_0 = arith.constant 0 : i32
    %c0_i32_1 = arith.constant 0 : i32
    return %c0_i32, %c0_i32_0 : i32, i32
  }
  func.func @transform_12(%arg0: i32) -> (i32, i32, i32) {
    %c0_i32 = arith.constant 0 : i32
    %c0_i32_0 = arith.constant 0 : i32
    %c0_i32_1 = arith.constant 0 : i32
    return %arg0, %c0_i32, %c0_i32_0 : i32, i32, i32
  }
}

</mosaic_0001>

<bundles_post_ra>
// kernel: tpu_custom_call.1
= control target key start
LH: loop header
LB: loop body
LE: loop exit
PB: predicated region body
PF: predicated region fallthrough
CT: control target
= control target key end

     0   :  { %s2008_s0 = inlined_call_operand.vmem [shape: f32[2,8,32], index: 0, kind: input, shape index: {}]   ;;  %s2009_s1 = inlined_call_operand.vmem [shape: f32[1,32], index: 1, kind: input, shape index: {}]   ;;  %s2010_s2 = inlined_call_operand.vmem [shape: f32[1,32], index: 2, kind: input, shape index: {}]   ;;  %s2011_s3 = inlined_call_operand.vmem [shape: bf16[32,96], index: 3, kind: input, shape index: {}]   ;;  %s2012_s4 = inlined_call_operand.vmem [shape: bf16[32,32], index: 4, kind: input, shape index: {}]   ;;  %s2013_s5 = inlined_call_operand.vmem [shape: f32[1,32], index: 5, kind: input, shape index: {}]   ;;  %s2014_s6 = inlined_call_operand.vmem [shape: f32[1,32], index: 6, kind: input, shape index: {}]   ;;  %s2015_s7 = inlined_call_operand.vmem [shape: f32[1,32], index: 7, kind: input, shape index: {}]   ;;  %s2016_s8 = inlined_call_operand.vmem [shape: bf16[32,128], index: 8, kind: input, shape index: {}]   ;;  %s2017_s9 = inlined_call_operand.vmem [shape: f32[1,128], index: 9, kind: input, shape index: {}]   ;;  %s2018_s10 = inlined_call_operand.vmem [shape: bf16[128,32], index: 10, kind: input, shape index: {}]   ;;  %s2019_s11 = inlined_call_operand.vmem [shape: f32[1,32], index: 11, kind: input, shape index: {}]   ;;  %s2020_s12 = inlined_call_operand.hbm [shape: f32[2,8,32], index: 12, kind: output, shape index: {}]  }
   0x1   :  { %2021 = sst [smem:[#allocation6_spill]] %s2008_s0 }
   0x2   :  { %2022 = sst [smem:[#allocation7_spill]] %s2009_s1 }
   0x3   :  { %17 = vsyncpa [#allocation4], 0 }
   0x4   :  { %19 = vsyncpa [#allocation4 + $0x1], 0  ;;  %s1744_s21 = smov 0   ;;  %s1746_s22 = smov 0  }
   0x5   :  { %s1748_s23 = smov 0   ;;  %s1750_s24 = smov 0  }
   0x6 LB: > { %s1765_s25 = sadd.s32 4294967295, %s1660_s24   ;;  %s1335_s26 = sadd.s32 4294967294, %s1660_s24   ;;  %s1660_s24 = sphi %s1750_s24, %s2030_s24   ;;  %s1656_s23 = sphi %s1748_s23, %s2029_s23   ;;  %s1652_s22 = sphi %s1746_s22, %s2028_s22   ;;  %s1648_s21 = sphi %s1744_s21, %s2027_s21  }
   0x7   : > { %s1769_s27 = sadd.s32 1, %s1660_s24   ;;  %s289_s28 = sadd.s32 1, %s1656_s23 }
   0x8   : > { %s286_s29 = ssub.s32 %s1660_s24, %s1769_s27  ;;  %p299_p0 = scmp.ne.s32.totalorder %s1656_s23, %s1652_s22 }
   0x9   : > { %p287_p1 = scmp.eq.s32.totalorder %s286_s29, 0  ;;  %p300_p2 = scmp.eq.s32.totalorder %s1765_s25, 1 }
   0xa   : > { %p305_p3 = scmp.ne.s32.totalorder %s1652_s22, %s1648_s21  ;;  %p306_p4 = scmp.eq.s32.totalorder %s1335_s26, 1 }
   0xb   : > { %s1780_s30 = scalar_select %p287_p1, %s1656_s23, %s289_s28  }
   0xc   : > { %p1782_p5 = por %p300_p2, %p299_p0  ;;  %p1786_p6 = por %p306_p4, %p305_p3 }
   0xd   : > { %p1338_p7 = scmp.ge.s32.totalorder %s1660_s24, 1  ;;  %p364_p8 = scmp.lt.s32.totalorder %s1660_s24, 3 }
   0xf   : > { %p365_p9 = pnand %p1338_p7, %p364_p8 }
  0x10   : > { %p405_p10 = scmp.lt.s32.totalorder (!%p365_p9), %s1765_s25, 1  ;;  %s2025_s0 = sld [smem:[#allocation6_spill]] (!%p365_p9) }
  0x11   : > { %368 = sbr.rel (%p365_p9) target bundleno = 2486 (0x9b6), region = 68  ;;  %s2026_s1 = sld [smem:[#allocation7_spill]] (!%p365_p9) }
  0x12   : > { %s1665_s20 = smov (!%p365_p9), 96   ;;  %s1666_s26 = smov (!%p365_p9), 88  }
  0x13   : > { %s1667_s28 = smov (!%p365_p9), 80   ;;  %s1668_s29 = smov (!%p365_p9), 112  }
  0x14   : > { %s1671_s17 = smov (!%p365_p9), 64   ;;  %s1672_s18 = smov (!%p365_p9), 56  }
  0x16   : > { %s406_s15 = scalar_select %p405_p10, %s1765_s25, 1  ;;  %vm413_vm0 = vcmask 261120   ;;  %v1564_v7 = vld [vmem:[%s2011_s3 + $0x8] sm:$0xff]   ;;  %v1662_v8 = vmov 0.0   ;;  %vm1663_vm1 = vmmov 0   ;;  %v1565_v9 = vld [vmem:[%s2011_s3] sm:$0xff]  }
  0x17   : > { %1417 = vmatprep.subr.bf16.mxu0 %v1662_v8  ;;  %1421 = vmatprep.mubr.msk.bf16.mxu0 %vm1663_vm1, %v1662_v8  ;;  %v1341_v14 = vld [vmem:[%s2026_s1] ss:$0 sm:$0xff]  ;;  %vm506_vm2 = vcmask 64512   ;;  %vm570_vm3 = vcmask 1043456   ;;  %vm615_vm4 = vcmask 60416   ;;  %vm734_vm5 = vcmask 126016  }
  0x18   : > { %s1340_s16 = sshll.u32 %s406_s15, 3  ;;  %1418 = vmatpush3.bf16.msra.mxu0 %v1564_v7  ;;  %1437 = vmatprep.subr.bf16.mxu1 %v1662_v8  ;;  %v1342_v16 = vld [vmem:[%s2010_s2] ss:$0 sm:$0xff]  ;;  %s1669_s15 = smov 72   ;;  %vm853_vm6 = vcmask 191616   ;;  %vm972_vm7 = vcmask 257216  }
  0x19   : > { %s408_s19 = scalar_lea.vmem %s2025_s0, %s1340_s16  ;;  %1419 = vmatprep.subr.bf16.mxu0 %v1662_v8  ;;  %1439 = vmatprep.mubr.msk.bf16.mxu1 %vm1663_vm1, %v1662_v8  ;;  %s1670_s16 = smov 104  }
  0x1a   : > { %v1797_v0 = vld [vmem:[%s408_s19] sm:$0xff]  ;;  %s1664_s19 = smov 120  }
  0x1b   : > { %v414_v1 = vsel %vm413_vm0, %v1797_v0, 0.0 }
  0x1c   : > { %415 = vadd.xlane.f32.xlu0 %v414_v1  ;;  %1420 = vmatpush3.bf16.msra.mxu0 %v1565_v9 }
  0x1d   : > { %1425 = vmatprep.subr.bf16.mxu0 %v1662_v8 }
  0xa5   : > { %v416_v2 = vpop.xlane.xlu0 %415 }
  0xa6   : > { %v418_v3 = vmul.f32 0.03125, %v416_v2 }
  0xa8   : > { %v419_v4 = vsub.f32 %v1797_v0, %v418_v3 }
  0xaa   : > { %v420_v5 = vmul.f32 %v419_v4, %v419_v4 }
  0xac   : > { %v421_v6 = vsel %vm413_vm0, %v420_v5, 0.0 }
  0xad   : > { %422 = vadd.xlane.f32.xlu0 %v421_v6 }
 0x136   : > { %v423_v10 = vpop.xlane.xlu0 %422 }
 0x137   : > { %v424_v11 = vmul.f32 0.03125, %v423_v10 }
 0x139   : > { %v425_v12 = vadd.f32 1e-05, %v424_v11 }
 0x13b   : > { %1578 = vrsqrt.f32 %v425_v12 }
 0x148   : > { %v1579_v13 = vpop.eup %1578 }
 0x149   : > { %v427_v15 = vmul.f32 %v1579_v13, %v419_v4 }
 0x14b   : > { %v434_v17 = vmul.f32 %v1341_v14, %v427_v15 }
 0x14d   : > { %v441_v18 = vadd.f32 %v1342_v16, %v434_v17 }
 0x14f   : > { %v442_v19 = vpack.c.bf16 %v441_v18, %v441_v18 }
 0x151   : > { %1422 = vmatmul.mubr.msk.bf16.vlgmr.msra.gmra.mxu0 %vm413_vm0, %v442_v19 }
 0x152   : > { %1427 = vmatprep.mubr.msk.bf16.mxu0 %vm1663_vm1, %v1662_v8 }
 0x211   : > { %v496_v20 = vpop.f32.mrf.mxu0 }
 0x212   : > { %v1826_v21 = vpack.c.bf16 %v496_v20, %v496_v20 }
 0x213   : > { %v1423_v22 = vpop.f32.mrf.mxu0 }
 0x214   : > { %617 = vrot.lane.b32.xlu0 %v1826_v21, %s1664_s19  ;;  %504 = vrot.lane.b32.xlu1 %v1826_v21, %s1665_s20  ;;  %s1673_s19 = smov 48   ;;  %s1674_s20 = smov 40  }
 0x215   : > { %v499_v23 = vpop.f32.mrf.mxu0 }
 0x217   : > { %v1424_v24 = vpop.f32.mrf.mxu0 }
 0x218   : > { %619 = vrot.lane.b32.xlu1 %v1826_v21, %s1666_s26  ;;  %s1675_s26 = smov 8  }
 0x21c   : > { %738 = vrot.lane.b32.xlu1 %v1826_v21, %s1667_s28  ;;  %s1678_s28 = smov [#allocation3]  }
 0x220   : > { %736 = vrot.lane.b32.xlu1 %v1826_v21, %s1668_s29  ;;  %s1604_s29 = sshll.u32 %s1678_s28, 4  ;;  %s1605_s29 = int_to_ptr.vmem [resolvable:$false] %s1604_s29 }
 0x224   : > { %857 = vrot.lane.b32.xlu1 %v1826_v21, %s1669_s15  ;;  %s1377_s15 = sshll.u32 %s1765_s25, 7 }
 0x225   : > { %s1966_s0 = scalar_lea.hbm %s2020_s12, %s1377_s15  ;;  %s1606_s15 = scalar_lea.vmem %s1605_s29, 256 }
 0x228   : > { %855 = vrot.lane.b32.xlu1 %v1826_v21, %s1670_s16 }
 0x286   : > { %v505_v25 = vpop.permute.xlu1 %504  ;;  %v618_v30 = vpop.permute.xlu0 %617 }
 0x287   : > { %v511_v26 = vsel %vm506_vm2, %v505_v25, 0 }
 0x288   : > { %1426 = vmatpush3.bf16.xpose.msra.mxu0 %v511_v26 }
 0x289   : > { %1431 = vmatprep.subr.bf16.mxu0 %v1662_v8 }
 0x28a   : > { %v620_v27 = vpop.permute.xlu1 %619 }
 0x28b   : > { %v625_v28 = vsel %vm506_vm2, %v620_v27, 0 }
 0x28c   : > { %1438 = vmatpush3.bf16.xpose.msra.mxu1 %v625_v28 }
 0x28d   : > { %1449 = vmatprep.subr.bf16.mxu1 %v1662_v8 }
 0x28e   : > { %v739_v29 = vpop.permute.xlu1 %738 }
 0x28f   : > { %1428 = vmatmul.mubr.msk.bf16.vlgmr.msra.gmra.mxu0 %vm506_vm2, %v1826_v21  ;;  %v744_v32 = vsel %vm506_vm2, %v739_v29, 0 }
 0x290   : > { %1433 = vmatprep.mubr.msk.bf16.mxu0 %vm1663_vm1, %v1662_v8 }
 0x292   : > { %v737_v31 = vpop.permute.xlu1 %736 }
 0x293   : > { %1440 = vmatmul.mubr.msk.bf16.vlgmr.msra.gmra.mxu1 %vm506_vm2, %v618_v30 }
 0x294   : > { %1450 = vmatpush3.bf16.xpose.msra.mxu1 %v744_v32  ;;  %1451 = vmatprep.mubr.msk.bf16.mxu1 %vm1663_vm1, %v1662_v8 }
 0x295   : > { %1461 = vmatprep.subr.bf16.mxu1 %v1662_v8 }
 0x296   : > { %v858_v33 = vpop.permute.xlu1 %857 }
 0x297   : > { %v863_v34 = vsel %vm506_vm2, %v858_v33, 0 }
 0x29a   : > { %v856_v35 = vpop.permute.xlu1 %855 }
 0x29b   : > { %1452 = vmatmul.mubr.msk.bf16.vlgmr.msra.gmra.mxu1 %vm506_vm2, %v737_v31 }
 0x29c   : > { %1462 = vmatpush3.bf16.xpose.msra.mxu1 %v863_v34  ;;  %1463 = vmatprep.mubr.msk.bf16.mxu1 %vm1663_vm1, %v1662_v8 }
 0x29d   : > { %1473 = vmatprep.subr.bf16.mxu1 %v1662_v8 }
 0x2a3   : > { %1464 = vmatmul.mubr.msk.bf16.vlgmr.msra.gmra.mxu1 %vm506_vm2, %v856_v35 }
 0x2a4   : > { %1477 = vmatprep.mubr.msk.bf16.mxu1 %vm1663_vm1, %v1662_v8 }
 0x34f   : > { %v547_v36 = vpop.f32.mrf.mxu0 }
 0x350   : > { %v553_v37 = vsel %vm506_vm2, %v547_v36, -inf }
 0x351   : > { %554 = vmax.xlane.f32.xlu1 %v553_v37  ;;  %v1429_v38 = vpop.f32.mrf.mxu0 }
 0x353   : > { %v550_v39 = vpop.f32.mrf.mxu0  ;;  %v661_v40 = vpop.f32.mrf.mxu1 }
 0x354   : > { %v667_v41 = vsel %vm506_vm2, %v661_v40, -inf }
 0x355   : > { %668 = vmax.xlane.f32.xlu0 %v667_v41  ;;  %v1430_v42 = vpop.f32.mrf.mxu0  ;;  %v1441_v43 = vpop.f32.mrf.mxu1 }
 0x357   : > { %v664_v44 = vpop.f32.mrf.mxu1 }
 0x359   : > { %v1442_v45 = vpop.f32.mrf.mxu1 }
 0x35b   : > { %v780_v46 = vpop.f32.mrf.mxu1 }
 0x35c   : > { %v786_v47 = vsel %vm506_vm2, %v780_v46, -inf }
 0x35d   : > { %v1453_v48 = vpop.f32.mrf.mxu1  ;;  %787 = vmax.xlane.f32.xlu1 %v786_v47 }
 0x35e   : > { %v1566_v48 = vld [vmem:[%s2012_s4 + $0x8] sm:$0xff]  }
 0x35f   : > { %v783_v49 = vpop.f32.mrf.mxu1  ;;  %1474 = vmatpush3.bf16.msra.mxu1 %v1566_v48 }
 0x360   : > { %1475 = vmatprep.subr.bf16.mxu1 %v1662_v8 }
 0x361   : > { %v1454_v50 = vpop.f32.mrf.mxu1 }
 0x362   : > { %v1567_v50 = vld [vmem:[%s2012_s4] sm:$0xff]  }
 0x363   : > { %v899_v51 = vpop.f32.mrf.mxu1  ;;  %1476 = vmatpush3.bf16.msra.mxu1 %v1567_v50 }
 0x364   : > { %v905_v52 = vsel %vm506_vm2, %v899_v51, -inf  ;;  %1489 = vmatprep.subr.bf16.mxu1 %v1662_v8 }
 0x365   : > { %906 = vmax.xlane.f32.xlu0 %v905_v52  ;;  %v1465_v53 = vpop.f32.mrf.mxu1 }
 0x367   : > { %v902_v54 = vpop.f32.mrf.mxu1 }
 0x369   : > { %v1466_v55 = vpop.f32.mrf.mxu1 }
 0x3da   : > { %v555_v56 = vpop.xlane.xlu1 %554 }
 0x3db   : > { %v556_v57 = vsub.f32 %v547_v36, %v555_v56 }
 0x3dd   : > { %v557_v58 = vmul.f32 1.442695, %v556_v57 }
 0x3de   : > { %v669_v59 = vpop.xlane.xlu0 %668 }
 0x3df   : > { %1580 = vpow2.f32 %v557_v58  ;;  %v670_v60 = vsub.f32 %v661_v40, %v669_v59 }
 0x3e1   : > { %v671_v61 = vmul.f32 1.442695, %v670_v60 }
 0x3e3   : > { %1582 = vpow2.f32 %v671_v61 }
 0x3e6   : > { %v788_v9 = vpop.xlane.xlu1 %787 }
 0x3e7   : > { %v789_v10 = vsub.f32 %v780_v46, %v788_v9 }
 0x3e9   : > { %v790_v11 = vmul.f32 1.442695, %v789_v10 }
 0x3ec   : > { %v1581_v62 = vpop.eup %1580 }
 0x3ed   : > { %v559_v63 = vsel %vm506_vm2, %v1581_v62, 0.0 }
 0x3ee   : > { %v907_v1 = vpop.xlane.xlu0 %906  ;;  %560 = vadd.xlane.f32.xlu1 %v559_v63 }
 0x3ef   : > { %v908_v2 = vsub.f32 %v899_v51, %v907_v1 }
 0x3f0   : > { %v1583_v3 = vpop.eup %1582 }
 0x3f1   : > { %v909_v4 = vmul.f32 1.442695, %v908_v2  ;;  %v673_v5 = vsel %vm506_vm2, %v1583_v3, 0.0  ;;  %v1360_v2 = vld [vmem:[%s2013_s5] ss:$0 sm:$0xff] }
 0x3f2   : > { %674 = vadd.xlane.f32.xlu0 %v673_v5 }
 0x3f3   : > { %1584 = vpow2.f32 %v909_v4 }
 0x3f4   : > { %1586 = vpow2.f32 %v790_v11 }
 0x3ff   : > { %565 = vrot.lane.b32.xlu1 %v1826_v21, %s1671_s17  ;;  %s1676_s17 = smov 16  }
 0x400   : > { %v1585_v6 = vpop.eup %1584 }
 0x401   : > { %v911_v7 = vsel %vm506_vm2, %v1585_v6, 0.0  ;;  %v1587_v12 = vpop.eup %1586 }
 0x402   : > { %912 = vadd.xlane.f32.xlu0 %v911_v7  ;;  %v792_v13 = vsel %vm506_vm2, %v1587_v12, 0.0 }
 0x418   : > { %679 = vrot.lane.b32.xlu0 %v1826_v21, %s1672_s18  ;;  %s1677_s18 = smov 24  }
 0x423   : > { %793 = vadd.xlane.f32.xlu1 %v792_v13 }
 0x434   : > { %798 = vrot.lane.b32.xlu1 %v1826_v21, %s1673_s19 }
 0x438   : > { %917 = vrot.lane.b32.xlu1 %v1826_v21, %s1674_s20  ;;  %s402_s20 = sand.u32 1, %s1652_s22  }
 0x439   : > { %s1263_s25 = scalar_lea.sflag [#allocation4], %s402_s20 }
 0x477   : > { %v561_v14 = vpop.xlane.xlu1 %560 }
 0x478   : > { %1588 = vrcp.f32 %v561_v14 }
 0x47b   : > { %v675_v15 = vpop.xlane.xlu0 %674  ;;  %v566_v16 = vpop.permute.xlu1 %565 }
 0x47c   : > { %v572_v17 = vsel %vm570_vm3, %v566_v16, 0  ;;  %1590 = vrcp.f32 %v675_v15  ;;  %v1569_v15 = vld [vmem:[%s2016_s8] sm:$0xff]  }
 0x47d   : > { %1432 = vmatpush3.bf16.msra.mxu0 %v572_v17 }
 0x47e   : > { %1443 = vmatprep.subr.bf16.mxu0 %v1662_v8 }
 0x485   : > { %v1589_v18 = vpop.eup %1588 }
 0x486   : > { %v563_v19 = vmul.f32 %v1589_v18, %v1581_v62 }
 0x488   : > { %v564_v20 = vpack.c.bf16 %v563_v19, %v563_v19 }
 0x489   : > { %v1591_v22 = vpop.eup %1590 }
 0x48a   : > { %1434 = vmatmul.mubr.msk.bf16.vlgmr.msra.gmra.mxu0 %vm506_vm2, %v564_v20  ;;  %v677_v21 = vmul.f32 %v1591_v22, %v1583_v3  ;;  %v1361_v20 = vld [vmem:[%s2014_s6] ss:$0 sm:$0xff] }
 0x48b   : > { %v913_v23 = vpop.xlane.xlu0 %912  ;;  %1445 = vmatprep.mubr.msk.bf16.mxu0 %vm1663_vm1, %v1662_v8 }
 0x48c   : > { %v678_v26 = vpack.c.bf16 %v677_v21, %v677_v21 }
 0x48f   : > { %v680_v24 = vpop.permute.xlu0 %679 }
 0x490   : > { %v685_v25 = vsel %vm570_vm3, %v680_v24, 0 }
 0x491   : > { %1444 = vmatpush3.bf16.msra.mxu0 %v685_v25 }
 0x492   : > { %1455 = vmatprep.subr.bf16.mxu0 %v1662_v8 }
 0x494   : > { %1446 = vmatmul.mubr.msk.bf16.vlgmr.msra.gmra.mxu0 %vm506_vm2, %v678_v26  ;;  %v1570_v26 = vld [vmem:[%s2018_s10 + $0x38] sm:$0xff]  }
 0x495   : > { %1457 = vmatprep.mubr.msk.bf16.mxu0 %vm1663_vm1, %v1662_v8 }
 0x4ac   : > { %v794_v27 = vpop.xlane.xlu1 %793 }
 0x4ad   : > { %1592 = vrcp.f32 %v794_v27  ;;  %v1571_v27 = vld [vmem:[%s2018_s10 + $0x30] sm:$0xff]  }
 0x4ae   : > { %1594 = vrcp.f32 %v913_v23  ;;  %v1362_v23 = vld [vmem:[%s2015_s7] ss:$0 sm:$0xff] }
 0x4b0   : > { %v799_v28 = vpop.permute.xlu1 %798 }
 0x4b1   : > { %v804_v29 = vsel %vm570_vm3, %v799_v28, 0  ;;  %v1572_v28 = vld [vmem:[%s2018_s10 + $0x28] sm:$0xff]  }
 0x4b2   : > { %1456 = vmatpush3.bf16.msra.mxu0 %v804_v29  ;;  %v1573_v29 = vld [vmem:[%s2018_s10 + $0x20] sm:$0xff]  }
 0x4b3   : > { %1467 = vmatprep.subr.bf16.mxu0 %v1662_v8 }
 0x4b4   : > { %v918_v32 = vpop.permute.xlu1 %917 }
 0x4b5   : > { %v923_v35 = vsel %vm570_vm3, %v918_v32, 0  ;;  %v1576_v32 = vld [vmem:[%s2018_s10 + $0x8] sm:$0xff]  }
 0x4ba   : > { %v1593_v30 = vpop.eup %1592 }
 0x4bb   : > { %v796_v31 = vmul.f32 %v1593_v30, %v1587_v12  ;;  %v1595_v34 = vpop.eup %1594  ;;  %v1574_v30 = vld [vmem:[%s2018_s10 + $0x18] sm:$0xff]  }
 0x4bc   : > { %v915_v36 = vmul.f32 %v1595_v34, %v1585_v6  ;;  %v1363_v34 = vld [vmem:[%s2017_s9] ss:$0 sm:$0xff] }
 0x4bd   : > { %v797_v33 = vpack.c.bf16 %v796_v31, %v796_v31  ;;  %v1575_v31 = vld [vmem:[%s2018_s10 + $0x10] sm:$0xff]  }
 0x4be   : > { %v916_v37 = vpack.c.bf16 %v915_v36, %v915_v36 }
 0x4bf   : > { %1458 = vmatmul.mubr.msk.bf16.vlgmr.msra.gmra.mxu0 %vm506_vm2, %v797_v33  ;;  %v1577_v33 = vld [vmem:[%s2018_s10] sm:$0xff]  }
 0x4c0   : > { %1468 = vmatpush3.bf16.msra.mxu0 %v923_v35  ;;  %1469 = vmatprep.mubr.msk.bf16.mxu0 %vm1663_vm1, %v1662_v8 }
 0x4c1   : > { %1481 = vmatprep.subr.bf16.mxu0 %v1662_v8 }
 0x4c7   : > { %1470 = vmatmul.mubr.msk.bf16.vlgmr.msra.gmra.mxu0 %vm506_vm2, %v916_v37 }
 0x4c8   : > { %1485 = vmatprep.mubr.msk.bf16.mxu0 %vm1663_vm1, %v1662_v8 }
 0x54a   : > { %v608_v38 = vpop.f32.mrf.mxu0 }
 0x54b   : > { %v614_v39 = vpack.c.bf16 %v608_v38, %v608_v38 }
 0x54c   : > { %v1435_v40 = vpop.f32.mrf.mxu0 }
 0x54d   : > { %616 = vst.msk [vmem:[#allocation2] sm:$0xf] %vm615_vm4, %v614_v39 }
 0x54e   : > { %v611_v41 = vpop.f32.mrf.mxu0 }
 0x550   : > { %v1436_v42 = vpop.f32.mrf.mxu0 }
 0x554   : > { %v721_v43 = vpop.f32.mrf.mxu0 }
 0x555   : > { %v1380_v44 = vpack.c.bf16 %v721_v43, %v721_v43 }
 0x556   : > { %v1447_v45 = vpop.f32.mrf.mxu0 }
 0x557   : > { %731 = vrot.lane.b32.xlu0 %v1380_v44, %s1675_s26  ;;  %s1339_s26 = sshll.u32 %s402_s20, 3 }
 0x558   : > { %v724_v46 = vpop.f32.mrf.mxu0  ;;  %s404_s16 = scalar_lea.vmem [#allocation3], %s1339_s26 }
 0x55a   : > { %v1448_v47 = vpop.f32.mrf.mxu0 }
 0x57f   : > { %v840_v49 = vpop.f32.mrf.mxu0 }
 0x580   : > { %v1381_v51 = vpack.c.bf16 %v840_v49, %v840_v49  ;;  %v1367_v49 = vld [vmem:[%s2019_s11] ss:$0 sm:$0xff] }
 0x581   : > { %v1459_v52 = vpop.f32.mrf.mxu0 }
 0x582   : > { %850 = vrot.lane.b32.xlu1 %v1381_v51, %s1676_s17  ;;  %s1276_s17 = sshll.u32 %s404_s16, 4  ;;  %s1968_s17 = int_to_ptr.vmem [resolvable:$true] %s1276_s17 }
 0x583   : > { %v843_v53 = vpop.f32.mrf.mxu0  ;;  %s1600_s26 = scalar_lea.vmem %s1968_s17, 128  ;;  %p1607_p0 = scmp.lt.s32.totalorder %s1968_s17, %s1605_s29 }
 0x584   : > { %p1601_p11 = scmp.ne.s32.totalorder %s1968_s17, %s1600_s26  ;;  %p1608_p1 = scmp.lt.s32.totalorder %s1606_s15, %s1600_s26 }
 0x585   : > { %v1460_v54 = vpop.f32.mrf.mxu0 }
 0x586   : > { %p1602_p12 = pnand %p1601_p11, %p1782_p5  ;;  %p1609_p2 = por %p1608_p1, %p1607_p0 }
 0x587   : > { %v959_v55 = vpop.f32.mrf.mxu0 }
 0x588   : > { %v1382_v56 = vpack.c.bf16 %v959_v55, %v959_v55  ;;  %p1603_p13 = pneg %p1602_p12 }
 0x589   : > { %v1471_v57 = vpop.f32.mrf.mxu0 }
 0x58a   : > { %969 = vrot.lane.b32.xlu0 %v1382_v56, %s1677_s18  ;;  %p1610_p3 = pnand %p1609_p2, %p1603_p13 }
 0x58b   : > { %v962_v58 = vpop.f32.mrf.mxu0 }
 0x58d   : > { %v1472_v59 = vpop.f32.mrf.mxu0 }
 0x5c9   : > { %v732_v60 = vpop.permute.xlu0 %731 }
 0x5ca   : > { %735 = vst.msk [vmem:[#allocation2] sm:$0xf] %vm734_vm5, %v732_v60 }
 0x5f4   : > { %v851_v61 = vpop.permute.xlu1 %850 }
 0x5f5   : > { %854 = vst.msk [vmem:[#allocation2] sm:$0xf] %vm853_vm6, %v851_v61 }
 0x5fc   : > { %v970_v62 = vpop.permute.xlu0 %969 }
 0x5fd   : > { %973 = vst.msk [vmem:[#allocation2] sm:$0xf] %vm972_vm7, %v970_v62 }
 0x604   : > { %v974_v63 = vld [vmem:[#allocation2] sm:$0xf] }
 0x605   : > { %1478 = vmatmul.mubr.msk.bf16.vlgmr.msra.gmra.mxu1 %vm413_vm0, %v974_v63 }
 0x606   : > { %1505 = vmatprep.mubr.msk.bf16.mxu1 %vm1663_vm1, %v1662_v8  ;;  %1490 = vmatpush3.bf16.msra.mxu1 %v1570_v26 }
 0x607   : > { %1491 = vmatprep.subr.bf16.mxu1 %v1662_v8 }
 0x60a   : > { %1492 = vmatpush3.bf16.msra.mxu1 %v1571_v27 }
 0x60b   : > { %1493 = vmatprep.subr.bf16.mxu1 %v1662_v8 }
 0x60e   : > { %1494 = vmatpush3.bf16.msra.mxu1 %v1572_v28 }
 0x60f   : > { %1495 = vmatprep.subr.bf16.mxu1 %v1662_v8 }
 0x612   : > { %1496 = vmatpush3.bf16.msra.mxu1 %v1573_v29 }
 0x613   : > { %1497 = vmatprep.subr.bf16.mxu1 %v1662_v8 }
 0x616   : > { %1498 = vmatpush3.bf16.msra.mxu1 %v1574_v30 }
 0x617   : > { %1499 = vmatprep.subr.bf16.mxu1 %v1662_v8 }
 0x61a   : > { %1500 = vmatpush3.bf16.msra.mxu1 %v1575_v31 }
 0x61b   : > { %1501 = vmatprep.subr.bf16.mxu1 %v1662_v8 }
 0x61e   : > { %1502 = vmatpush3.bf16.msra.mxu1 %v1576_v32 }
 0x61f   : > { %1503 = vmatprep.subr.bf16.mxu1 %v1662_v8 }
 0x622   : > { %1504 = vmatpush3.bf16.msra.mxu1 %v1577_v33 }
 0x6c5   : > { %v1028_v1 = vpop.f32.mrf.mxu1 }
 0x6c6   : > { %v1034_v3 = vadd.f32 %v1028_v1, %v1797_v0  ;;  %v1568_v0 = vld [vmem:[%s2016_s8 + $0x8] sm:$0xff]  }
 0x6c7   : > { %v1479_v4 = vpop.f32.mrf.mxu1  ;;  %1482 = vmatpush3.bf16.msra.mxu0 %v1568_v0 }
 0x6c8   : > { %v1903_v5 = vadd.f32 %v1360_v2, %v1034_v3  ;;  %1483 = vmatprep.subr.bf16.mxu0 %v1662_v8 }
 0x6c9   : > { %v1031_v6 = vpop.f32.mrf.mxu1 }
 0x6ca   : > { %v1045_v7 = vsel %vm413_vm0, %v1903_v5, 0.0 }
 0x6cb   : > { %1046 = vadd.xlane.f32.xlu1 %v1045_v7  ;;  %v1480_v9 = vpop.f32.mrf.mxu1  ;;  %1484 = vmatpush3.bf16.msra.mxu0 %v1569_v15 }
 0x754   : > { %v1047_v10 = vpop.xlane.xlu1 %1046 }
 0x755   : > { %v1048_v11 = vmul.f32 0.03125, %v1047_v10 }
 0x757   : > { %v1049_v12 = vsub.f32 %v1903_v5, %v1048_v11 }
 0x759   : > { %v1050_v13 = vmul.f32 %v1049_v12, %v1049_v12 }
 0x75b   : > { %v1051_v14 = vsel %vm413_vm0, %v1050_v13, 0.0 }
 0x75c   : > { %1052 = vadd.xlane.f32.xlu0 %v1051_v14 }
 0x7e5   : > { %v1053_v16 = vpop.xlane.xlu0 %1052 }
 0x7e6   : > { %v1054_v17 = vmul.f32 0.03125, %v1053_v16 }
 0x7e8   : > { %v1055_v18 = vadd.f32 1e-05, %v1054_v17 }
 0x7ea   : > { %1596 = vrsqrt.f32 %v1055_v18 }
 0x7f7   : > { %v1597_v19 = vpop.eup %1596 }
 0x7f8   : > { %v1057_v22 = vmul.f32 %v1597_v19, %v1049_v12 }
 0x7fa   : > { %v1064_v21 = vmul.f32 %v1361_v20, %v1057_v22 }
 0x7fc   : > { %v1071_v24 = vadd.f32 %v1362_v23, %v1064_v21 }
 0x7fe   : > { %v1072_v25 = vpack.c.bf16 %v1071_v24, %v1071_v24 }
 0x800   : > { %1486 = vmatmul.mubr.msk.bf16.vlgmr.msra.gmra.mxu0 %vm413_vm0, %v1072_v25 }
 0x8c0   : > { %v1133_v35 = vpop.f32.mrf.mxu0 }
 0x8c1   : > { %v1134_v36 = vadd.f32 %v1363_v34, %v1133_v35 }
 0x8c2   : > { %v1487_v37 = vpop.f32.mrf.mxu0 }
 0x8c3   : > { %v1139_v38 = vmul.f32 %v1134_v36, %v1134_v36 }
 0x8c4   : > { %v1136_v39 = vpop.f32.mrf.mxu0 }
 0x8c5   : > { %v1140_v40 = vmul.f32 %v1139_v38, %v1134_v36 }
 0x8c6   : > { %v1488_v41 = vpop.f32.mrf.mxu0 }
 0x8c7   : > { %v1141_v42 = vmul.f32 0.044715, %v1140_v40 }
 0x8c9   : > { %v1142_v43 = vadd.f32 %v1141_v42, %v1134_v36 }
 0x8cb   : > { %v1143_v44 = vmul.f32 0.7978846, %v1142_v43 }
 0x8cd   : > { %1598 = vtanh.f32 %v1143_v44 }
 0x8da   : > { %v1599_v45 = vpop.eup %1598 }
 0x8db   : > { %v1145_v8 = vadd.f32 1.0, %v1599_v45 }
 0x8dd   : > { %v1146_v46 = vmul.f32 0.5, %v1145_v8 }
 0x8df   : > { %v1147_v47 = vmul.f32 %v1146_v46, %v1134_v36 }
 0x8e1   : > { %v1148_v48 = vpack.c.bf16 %v1147_v47, %v1147_v47 }
 0x8e3   : > { %1506 = vmatmul.mubr.bf16.vlgmr.msra.gmra.mxu1 %v1148_v48 }
 0x9a3   : > { %v1254_v50 = vpop.f32.mrf.mxu1 }
 0x9a4   : > { %v1255_v51 = vadd.f32 %v1367_v49, %v1254_v50 }
 0x9a5   : > { %v1507_v52 = vpop.f32.mrf.mxu1 }
 0x9a6   : > { %v1260_v53 = vadd.f32 %v1255_v51, %v1903_v5 }
 0x9a7   : > { %v1257_v54 = vpop.f32.mrf.mxu1 }
 0x9a8   : > { %1261 = vst.msk [vmem:[%s404_s16] sm:$0xff] %vm413_vm0, %v1260_v53 }
 0x9a9   : > { %v1508_v55 = vpop.f32.mrf.mxu1 }
 0x9aa   : > { %1613 = shalt.err (!%p1610_p3)
}
 0x9ab   : > { %s1614_s16 = scalar_lea.hbm %s1966_s0, 128  ;;  %s1618_s19 = scalar_lea.hbm %s2020_s12, 256 }
 0x9ac   : > { %p1615_p4 = scmp.ne.s32.totalorder %s1966_s0, %s1614_s16  ;;  %p1619_p9 = scmp.lt.s32.totalorder %s1966_s0, %s2020_s12 }
 0x9ad   : > { %p1620_p10 = scmp.lt.s32.totalorder %s1618_s19, %s1614_s16 }
 0x9ae   : > { %p1616_p7 = pnand %p1615_p4, %p1782_p5 }
 0x9af   : > { %p1621_p11 = por %p1620_p10, %p1619_p9 }
 0x9b0   : > { %p1617_p8 = pneg %p1616_p7 }
 0x9b2   : > { %p1622_p12 = pnand %p1621_p11, %p1617_p8 }
 0x9b4   : > { %1625 = shalt.err (!%p1622_p12)
}
 0x9b5   : > { %1509 = dma.vmem_to_hbm [thread:$0]  (%p1782_p5), %s1968_s17, 128, %s1966_s0, %s1263_s25  }
 0x9b6 PF: > { %p1515_p13 = scmp.ge.s32.totalorder %s1660_s24, 2  ;;  %s1288_s26 = sand.u32 1, %s1648_s21  }
 0x9b7   : > { %s1289_s1 = scalar_lea.sflag [#allocation4], %s1288_s26 }
 0x9b8   : > { %p1512_p0 = pnand %p1515_p13, %p1786_p6 }
 0x9ba   : > { %p1513_p1 = pneg %p1512_p0 }
 0x9bc   : > { %1643 = dma.done.wait (%p1513_p1), %s1289_s1, 128  }
 0x9bd   : > { %1645 = vsyncadd (%p1513_p1), %s1289_s1, 4294967168  ;;  %p22_p2 = scmp.ge.s32.totalorder %s1769_s27, 4   ;;  %s2027_s21 = smov %s1652_s22 }
 0x9be   : > { %s2028_s22 = smov %s1656_s23  ;;  %s2029_s23 = smov %s1780_s30 }
 0x9bf   : > { %s2030_s24 = smov %s1769_s27  ;;  %24 = sbr.rel (!%p22_p2) target bundleno = 6 (0x6), region = 103 }
 0x9c4   :  { %1294 = vsyncpa [#allocation4], 1 }
 0x9c5   :  { %1296 = vsyncpa [#allocation4 + $0x1], 1 }

</bundles_post_ra>
